<compile_context>
chip_gen: v7x
topology: tpu7x:2x2x1
jax: 0.10.0
libtpu: 0.0.40
codegen_flags: <defaults>
</compile_context>

<pallas_src>
import jax
import jax.numpy as jnp
from jax.experimental import pallas as pl
from jax.experimental.pallas import tpu as pltpu

BN_EPS = 1e-5


# ---------------------------------------------------------------------------
# Kernels
# ---------------------------------------------------------------------------
def _make_point_mlp_kernel(n_chunks, chunk):
    """conv2+bn2+relu -> conv3 (chunked) -> running max over points.

    Refs:
      x_ref:   (1, TN, 64) bf16 tile of the conv1 output
      w2, b2:  BN-folded conv2 weight (64,128) bf16 / bias (1,128) f32
      w3:      BN-folded conv3 weight (128,1024) bf16 (bias applied post-pool)
      out_ref: (1, 1, 1024) f32 partial max for this (batch, partition) block
      acc_ref: (1, 1024) f32 running max scratch
    """

    def kernel(x_ref, w2_ref, b2_ref, w3_ref, out_ref, acc_ref):
        n = pl.program_id(2)

        @pl.when(n == 0)
        def _init():
            acc_ref[...] = jnp.full_like(acc_ref, -jnp.inf)

        h1 = x_ref[0]                                              # (TN, 64) bf16
        h2 = jnp.dot(h1, w2_ref[...],
                     preferred_element_type=jnp.float32) + b2_ref[...]
        h2 = jnp.maximum(h2, 0.0).astype(jnp.bfloat16)             # (TN, 128)

        # conv3 chunked over output channels: MXU(chunk i+1) overlaps
        # XLU-max(chunk i); only a (TN, chunk) f32 slab is live at a time.
        # TODO(synk): on v6e/v7x the K=128 contraction half-fills the 256-wide
        # MXU; packing two point sub-tiles per pass could raise utilisation.
        for c in range(n_chunks):
            lo = c * chunk
            h3c = jnp.dot(h2, w3_ref[:, lo:lo + chunk],
                          preferred_element_type=jnp.float32)      # (TN, chunk)
            acc_ref[:, lo:lo + chunk] = jnp.maximum(
                acc_ref[:, lo:lo + chunk],
                jnp.max(h3c, axis=0, keepdims=True))

        @pl.when(n == pl.num_programs(2) - 1)
        def _flush():
            out_ref[0] = acc_ref[...]

    return kernel


def _head_kernel(gp_ref, b3_ref, w4_ref, b4_ref, w5_ref, b5_ref, w6_ref,
                 b6i_ref, out_ref):
    """Combine partition maxes, finish conv3 (bias+ReLU), FC head with M=B."""
    g = jnp.max(gp_ref[...], axis=1)                               # (B, 1024)
    g = jnp.maximum(g + b3_ref[...], 0.0).astype(jnp.bfloat16)
    h4 = jnp.dot(g, w4_ref[...], preferred_element_type=jnp.float32) + b4_ref[...]
    h4 = jnp.maximum(h4, 0.0).astype(jnp.bfloat16)
    h5 = jnp.dot(h4, w5_ref[...], preferred_element_type=jnp.float32) + b5_ref[...]
    h5 = jnp.maximum(h5, 0.0).astype(jnp.bfloat16)
    # identity already folded into b6i
    out_ref[...] = jnp.dot(h5, w6_ref[...],
                           preferred_element_type=jnp.float32) + b6i_ref[...]


# ---------------------------------------------------------------------------
# Parameter setup / weight preparation
# ---------------------------------------------------------------------------
def _fold_bn(w, b, gamma, beta, mean, var):
    """Fold eval-mode BatchNorm into a (out, in) weight + (out,) bias.

    Returns transposed weight (in, out) and bias (1, out) ready for x @ W + b.
    """
    s = gamma / jnp.sqrt(var + BN_EPS)               # (out,)
    w_f = w * s[:, None]                             # (out, in)
    b_f = b * s + (beta - mean * s)                  # (out,)
    return jnp.transpose(w_f), b_f.reshape(1, -1)


def _prepare_weights(params):
    """BN-folded, transposed weights; bf16 matmul operands, f32 biases."""
    w1t, b1 = _fold_bn(params["conv1_w"], params["conv1_b"], *params["bn1"])
    w2t, b2 = _fold_bn(params["conv2_w"], params["conv2_b"], *params["bn2"])
    w3t, b3 = _fold_bn(params["conv3_w"], params["conv3_b"], *params["bn3"])
    w4t, b4 = _fold_bn(params["fc1_w"], params["fc1_b"], *params["bn4"])
    w5t, b5 = _fold_bn(params["fc2_w"], params["fc2_b"], *params["bn5"])
    w6t = jnp.transpose(params["fc3_w"])
    # Fold the 3x3 identity into the fc3 bias (the two adds commute).
    b6i = params["fc3_b"].reshape(1, 9) + jnp.eye(3, dtype=jnp.float32).reshape(1, 9)
    bf = jnp.bfloat16
    return dict(
        w1=w1t, b1=b1,                     # conv1 stays f32 (wrapper matmul)
        w2=w2t.astype(bf), b2=b2,
        w3=w3t.astype(bf), b3=b3,
        w4=w4t.astype(bf), b4=b4,
        w5=w5t.astype(bf), b5=b5,
        w6=w6t.astype(bf), b6i=b6i)


def make_params(channel, key):
    ks = jax.random.split(key, 32)
    k = iter(range(32))

    def w(shape, scale=0.1):
        return scale * jax.random.normal(ks[next(k)], shape, dtype=jnp.float32)

    def bn(n):
        gamma = 1.0 + 0.1 * jax.random.normal(ks[next(k)], (n,), dtype=jnp.float32)
        beta = 0.1 * jax.random.normal(ks[next(k)], (n,), dtype=jnp.float32)
        mean = 0.1 * jax.random.normal(ks[next(k)], (n,), dtype=jnp.float32)
        var = jnp.abs(jax.random.normal(ks[next(k)], (n,), dtype=jnp.float32)) + 0.5
        return gamma, beta, mean, var

    p = {}
    # conv weights stored PyTorch-style (out, in); kernel_size=1 dim dropped
    p["conv1_w"], p["conv1_b"] = w((64, channel)), w((64,))
    p["conv2_w"], p["conv2_b"] = w((128, 64)), w((128,))
    p["conv3_w"], p["conv3_b"] = w((1024, 128)), w((1024,))
    p["fc1_w"], p["fc1_b"] = w((512, 1024)), w((512,))
    p["fc2_w"], p["fc2_b"] = w((256, 512)), w((256,))
    p["fc3_w"], p["fc3_b"] = w((9, 256)), w((9,))
    p["bn1"], p["bn2"], p["bn3"], p["bn4"], p["bn5"] = (
        bn(64), bn(128), bn(1024), bn(512), bn(256))
    return p


# ---------------------------------------------------------------------------
# Forward (Pallas)
# ---------------------------------------------------------------------------
def _round_up(x, m):
    return ((x + m - 1) // m) * m


def _choose_tile_n(n_points, tile_n):
    if tile_n is None:
        # Default: big tiles amortise the ~0.35 us per-grid-step overhead and
        # give long uninterrupted MXU streams.  1024 is a multiple of the
        # 256-row MXU M granularity (v6e/v7x) and per-tile live state with the
        # chunked conv3 is only ~2.5 MB -- well inside every chip's VMEM.
        tile_n = 1024
    # Never bigger than the (8-aligned) point count; keep sublane axis aligned.
    return max(8, _round_up(min(tile_n, _round_up(n_points, 8)), 8))


def stn3d_forward(x_bcn, params, *, tile_n=None, num_point_partitions=None,
                  conv3_chunks=4):
    """x_bcn: (B, C, N) float32, same convention as the PyTorch module."""
    B, C, N = x_bcn.shape
    assert 1024 % conv3_chunks == 0 and (1024 // conv3_chunks) % 128 == 0
    chunk = 1024 // conv3_chunks
    prep = _prepare_weights(params)

    # conv1 (+bn1+relu) in the wrapper, in f32, fused by XLA with the NCW->NWC
    # transpose and bf16 cast.  K=3 is a degenerate MXU shape and a 3-lane
    # input block is layout poison; feeding the kernel a 64-channel bf16 slab
    # gives clean, lane-dense DMA tiles (and avoids bf16-rounding raw coords).
    x_bnc = jnp.transpose(x_bcn, (0, 2, 1))                            # (B,N,C) f32
    h1 = jax.nn.relu(jnp.dot(x_bnc, prep["w1"]) + prep["b1"])          # (B,N,64)
    h1 = h1.astype(jnp.bfloat16)

    tn = _choose_tile_n(N, tile_n)
    n_tiles_total = pl.cdiv(N, tn)
    # Point-partitioning keeps both v7x TensorCores busy when B == 1 (each
    # partition produces an independent partial max, combined in the head).
    if num_point_partitions is None:
        num_point_partitions = 2 if (B == 1 and n_tiles_total >= 2) else 1
    P = max(1, int(num_point_partitions))
    n_tiles = pl.cdiv(n_tiles_total, P)
    n_pad = P * n_tiles * tn

    if n_pad != N:
        # Edge-replicate points up to the tile grid: duplicates of real rows
        # can never win the max, so no in-kernel masking pass is needed.
        h1 = jnp.pad(h1, ((0, 0), (0, n_pad - N), (0, 0)), mode="edge")

    flops1 = 2 * B * n_pad * (64 * 128 + 128 * 1024)
    bytes1 = (B * n_pad * 64 * 2 + (64 * 128 + 128 * 1024) * 2 + 128 * 4
              + B * P * 1024 * 4)
    cost1 = pl.CostEstimate(flops=int(flops1), transcendentals=0,
                            bytes_accessed=int(bytes1))

    pooled = pl.pallas_call(
        _make_point_mlp_kernel(conv3_chunks, chunk),
        out_shape=jax.ShapeDtypeStruct((B, P, 1024), jnp.float32),
        grid=(B, P, n_tiles),
        in_specs=[
            pl.BlockSpec((1, tn, 64), lambda b, p, n: (b, p * n_tiles + n, 0)),
            pl.BlockSpec((64, 128), lambda b, p, n: (0, 0)),
            pl.BlockSpec((1, 128), lambda b, p, n: (0, 0)),
            pl.BlockSpec((128, 1024), lambda b, p, n: (0, 0)),
        ],
        out_specs=pl.BlockSpec((1, 1, 1024), lambda b, p, n: (b, p, 0)),
        scratch_shapes=[pltpu.VMEM((1, 1024), jnp.float32)],
        compiler_params=pltpu.CompilerParams(
            dimension_semantics=("parallel", "parallel", "arbitrary"),
            vmem_limit_bytes=32 * 1024 * 1024),
        cost_estimate=cost1,
    )(h1, prep["w2"], prep["b2"], prep["w3"])

    # FC head batched over B: large head weights stream through the MXU once
    # per call instead of once per batch row (extra HBM traffic: 4 KB/batch).
    head_ws = [prep["b3"], prep["w4"], prep["b4"], prep["w5"], prep["b5"],
               prep["w6"], prep["b6i"]]
    head_in_specs = [pl.BlockSpec((B, P, 1024), lambda i: (0, 0, 0))]
    head_in_specs += [pl.BlockSpec(tuple(w.shape), lambda i: (0, 0))
                      for w in head_ws]          # all head operands are 2-D
    out9 = pl.pallas_call(
        _head_kernel,
        out_shape=jax.ShapeDtypeStruct((B, 9), jnp.float32),
        grid=(1,),
        in_specs=head_in_specs,
        out_specs=pl.BlockSpec((B, 9), lambda i: (0, 0)),
        compiler_params=pltpu.CompilerParams(
            dimension_semantics=("arbitrary",)),
    )(pooled, *head_ws)

    return out9.reshape(B, 3, 3)


# ---------------------------------------------------------------------------
# Pure-JAX references (sanity checks)
# ---------------------------------------------------------------------------
def stn3d_reference(x_bcn, params):
    """Full-precision (f32) reference matching the PyTorch module in eval mode."""
    x = jnp.transpose(x_bcn, (0, 2, 1))  # (B, N, C)
    w1t, b1 = _fold_bn(params["conv1_w"], params["conv1_b"], *params["bn1"])
    w2t, b2 = _fold_bn(params["conv2_w"], params["conv2_b"], *params["bn2"])
    w3t, b3 = _fold_bn(params["conv3_w"], params["conv3_b"], *params["bn3"])
    w4t, b4 = _fold_bn(params["fc1_w"], params["fc1_b"], *params["bn4"])
    w5t, b5 = _fold_bn(params["fc2_w"], params["fc2_b"], *params["bn5"])
    h = jax.nn.relu(x @ w1t + b1)
    h = jax.nn.relu(h @ w2t + b2)
    h = jax.nn.relu(h @ w3t + b3)
    g = jnp.max(h, axis=1)  # (B, 1024)
    h = jax.nn.relu(g @ w4t + b4)
    h = jax.nn.relu(h @ w5t + b5)
    y = h @ jnp.transpose(params["fc3_w"]) + params["fc3_b"]
    y = y + jnp.eye(3, dtype=jnp.float32).reshape(1, 9)
    return y.reshape(-1, 3, 3)


def stn3d_reference_bf16(x_bcn, params):
    """Reference with the same bf16 rounding / hoisted bias+ReLU as the kernels."""
    p = _prepare_weights(params)
    x = jnp.transpose(x_bcn, (0, 2, 1))

    def mm(a, w):
        return jnp.dot(a, w, preferred_element_type=jnp.float32)

    h1 = jax.nn.relu(jnp.dot(x, p["w1"]) + p["b1"]).astype(jnp.bfloat16)
    h2 = jnp.maximum(mm(h1, p["w2"]) + p["b2"], 0.0).astype(jnp.bfloat16)
    h3 = mm(h2, p["w3"])                                   # (B, N, 1024) f32
    g = jnp.maximum(jnp.max(h3, axis=1) + p["b3"], 0.0).astype(jnp.bfloat16)
    h4 = jnp.maximum(mm(g, p["w4"]) + p["b4"], 0.0).astype(jnp.bfloat16)
    h5 = jnp.maximum(mm(h4, p["w5"]) + p["b5"], 0.0).astype(jnp.bfloat16)
    y = mm(h5, p["w6"]) + p["b6i"]
    return y.reshape(-1, 3, 3)


if __name__ == "__main__":
    B, C, N = 2, 3, 256  # batch, input channels (3D points), number of points
    key = jax.random.PRNGKey(0)
    k_x, k_p = jax.random.split(key)
    x = jax.random.normal(k_x, (B, C, N), dtype=jnp.float32)
    params = make_params(C, k_p)

    ref_bf16 = stn3d_reference_bf16(x, params)   # same bf16 rounding as kernel
    ref_f32 = stn3d_reference(x, params)         # full-precision reference

    # tile_n=96 exercises the multi-tile + ragged (edge-padded) path at small N.
    out = stn3d_forward(x, params, tile_n=96)
    out = jax.block_until_ready(out)
    assert out.shape == (B, 3, 3)
    assert jnp.allclose(out, ref_bf16, rtol=1e-2, atol=1e-2), "mismatch vs bf16 reference"
    assert jnp.allclose(out, ref_f32, rtol=1e-1, atol=1e-1), "mismatch vs f32 reference"

    # B == 1 exercises the dual-TensorCore point-partition path (P = 2).
    out1 = stn3d_forward(x[:1], params, tile_n=96)
    out1 = jax.block_until_ready(out1)
    assert jnp.allclose(out1, ref_bf16[:1], rtol=1e-2, atol=1e-2), "mismatch (B=1 path)"

    print("KERNEL_OK")
</pallas_src>

<mosaic_0001>
module attributes {stable_mosaic.version = 11 : i64} {
  func.func @kernel(%arg0: i32, %arg1: i32, %arg2: i32, %arg3: memref<1x96x64xbf16, #tpu.memory_space<vmem>>, %arg4: memref<64x128xbf16, #tpu.memory_space<vmem>>, %arg5: memref<1x128xf32, #tpu.memory_space<vmem>>, %arg6: memref<128x1024xbf16, #tpu.memory_space<vmem>>, %arg7: memref<1x1x1024xf32, #tpu.memory_space<vmem>>, %arg8: memref<1x1024xf32, #tpu.memory_space<vmem>>) attributes {dimension_semantics = [#tpu.dimension_semantics<parallel>, #tpu.dimension_semantics<parallel>, #tpu.dimension_semantics<arbitrary>], iteration_bounds = array<i64: 2, 1, 3>, scalar_prefetch = 0 : i64, scratch_operands = 1 : i64, tpu.core_type = #tpu.core_type<tc>, window_params = [{transform_indices = @transform_0, window_bounds = array<i64: 1, 96, 64>}, {pipeline_mode = #tpu.pipeline_mode<synchronous>, transform_indices = @transform_1, window_bounds = array<i64: 64, 128>}, {pipeline_mode = #tpu.pipeline_mode<synchronous>, transform_indices = @transform_2, window_bounds = array<i64: 1, 128>}, {pipeline_mode = #tpu.pipeline_mode<synchronous>, transform_indices = @transform_3, window_bounds = array<i64: 128, 1024>}, {transform_indices = @transform_4, window_bounds = array<i64: 1, 1, 1024>}]} {
    %c0_i32 = arith.constant 0 : i32
    %0 = arith.cmpi eq, %arg2, %c0_i32 : i32
    %1 = arith.extui %0 : i1 to i32
    %c0_i32_0 = arith.constant 0 : i32
    %2 = arith.cmpi ne, %1, %c0_i32_0 : i32
    scf.if %2 {
      %cst_38 = arith.constant 0xFF800000 : f32
      %44 = vector.broadcast %cst_38 : f32 to vector<1x1024xf32>
      %c0_39 = arith.constant 0 : index
      %c0_40 = arith.constant 0 : index
      %45 = vector.load %arg8[%c0_39, %c0_40] : memref<1x1024xf32, #tpu.memory_space<vmem>>, vector<1x1024xf32>
      tpu.vector_store %arg8[%c0_39, %c0_40], %44 {strides = array<i32>} : memref<1x1024xf32, #tpu.memory_space<vmem>>, vector<1x1024xf32>,
    } else {
    }
    %c0 = arith.constant 0 : index
    %c0_1 = arith.constant 0 : index
    %c0_2 = arith.constant 0 : index
    %3 = vector.load %arg3[%c0, %c0_1, %c0_2] : memref<1x96x64xbf16, #tpu.memory_space<vmem>>, vector<1x96x64xbf16>
    %4 = vector.shape_cast %3 : vector<1x96x64xbf16> to vector<96x64xbf16>
    %c0_3 = arith.constant 0 : index
    %c0_4 = arith.constant 0 : index
    %5 = vector.load %arg4[%c0_3, %c0_4] : memref<64x128xbf16, #tpu.memory_space<vmem>>, vector<64x128xbf16>
    %cst = arith.constant dense<0.000000e+00> : vector<96x128xf32>
    %6 = tpu.matmul %4, %5, %cst {dimension_numbers = #tpu.dot_dimension_numbers<[1], [0], [0], [1], [0, 0, 1, 1], [], []>} : vector<96x64xbf16>, vector<64x128xbf16>, vector<96x128xf32> -> vector<96x128xf32>
    %c0_5 = arith.constant 0 : index
    %c0_6 = arith.constant 0 : index
    %7 = vector.load %arg5[%c0_5, %c0_6] : memref<1x128xf32, #tpu.memory_space<vmem>>, vector<1x128xf32>
    %8 = vector.broadcast %7 : vector<1x128xf32> to vector<96x128xf32>
    %9 = arith.addf %6, %8 : vector<96x128xf32>
    %cst_7 = arith.constant 0.000000e+00 : f32
    %10 = vector.broadcast %cst_7 : f32 to vector<96x128xf32>
    %11 = arith.maximumf %9, %10 : vector<96x128xf32>
    %12 = arith.truncf %11 : vector<96x128xf32> to vector<96x128xbf16>
    %c0_8 = arith.constant 0 : index
    %c0_9 = arith.constant 0 : index
    %13 = vector.load %arg6[%c0_8, %c0_9] : memref<128x1024xbf16, #tpu.memory_space<vmem>>, vector<128x256xbf16>
    %cst_10 = arith.constant dense<0.000000e+00> : vector<96x256xf32>
    %14 = tpu.matmul %12, %13, %cst_10 {dimension_numbers = #tpu.dot_dimension_numbers<[1], [0], [0], [1], [0, 0, 1, 1], [], []>} : vector<96x128xbf16>, vector<128x256xbf16>, vector<96x256xf32> -> vector<96x256xf32>
    %c0_11 = arith.constant 0 : index
    %c0_12 = arith.constant 0 : index
    %15 = vector.load %arg8[%c0_11, %c0_12] : memref<1x1024xf32, #tpu.memory_space<vmem>>, vector<1x256xf32>
    %cst_13 = arith.constant dense<0xFF800000> : vector<256xf32>
    %16 = vector.multi_reduction <maximumf>, %14, %cst_13 [0] : vector<96x256xf32> to vector<256xf32>
    %17 = vector.shape_cast %16 : vector<256xf32> to vector<1x256xf32>
    %18 = arith.maximumf %15, %17 : vector<1x256xf32>
    %c0_14 = arith.constant 0 : index
    %c0_15 = arith.constant 0 : index
    %19 = vector.load %arg8[%c0_14, %c0_15] : memref<1x1024xf32, #tpu.memory_space<vmem>>, vector<1x256xf32>
    tpu.vector_store %arg8[%c0_14, %c0_15], %18 {strides = array<i32>} : memref<1x1024xf32, #tpu.memory_space<vmem>>, vector<1x256xf32>,
    %c0_16 = arith.constant 0 : index
    %c256 = arith.constant 256 : index
    %20 = vector.load %arg6[%c0_16, %c256] : memref<128x1024xbf16, #tpu.memory_space<vmem>>, vector<128x256xbf16>
    %cst_17 = arith.constant dense<0.000000e+00> : vector<96x256xf32>
    %21 = tpu.matmul %12, %20, %cst_17 {dimension_numbers = #tpu.dot_dimension_numbers<[1], [0], [0], [1], [0, 0, 1, 1], [], []>} : vector<96x128xbf16>, vector<128x256xbf16>, vector<96x256xf32> -> vector<96x256xf32>
    %c0_18 = arith.constant 0 : index
    %c256_19 = arith.constant 256 : index
    %22 = vector.load %arg8[%c0_18, %c256_19] : memref<1x1024xf32, #tpu.memory_space<vmem>>, vector<1x256xf32>
    %cst_20 = arith.constant dense<0xFF800000> : vector<256xf32>
    %23 = vector.multi_reduction <maximumf>, %21, %cst_20 [0] : vector<96x256xf32> to vector<256xf32>
    %24 = vector.shape_cast %23 : vector<256xf32> to vector<1x256xf32>
    %25 = arith.maximumf %22, %24 : vector<1x256xf32>
    %c0_21 = arith.constant 0 : index
    %c256_22 = arith.constant 256 : index
    %26 = vector.load %arg8[%c0_21, %c256_22] : memref<1x1024xf32, #tpu.memory_space<vmem>>, vector<1x256xf32>
    tpu.vector_store %arg8[%c0_21, %c256_22], %25 {strides = array<i32>} : memref<1x1024xf32, #tpu.memory_space<vmem>>, vector<1x256xf32>,
    %c0_23 = arith.constant 0 : index
    %c512 = arith.constant 512 : index
    %27 = vector.load %arg6[%c0_23, %c512] : memref<128x1024xbf16, #tpu.memory_space<vmem>>, vector<128x256xbf16>
    %cst_24 = arith.constant dense<0.000000e+00> : vector<96x256xf32>
    %28 = tpu.matmul %12, %27, %cst_24 {dimension_numbers = #tpu.dot_dimension_numbers<[1], [0], [0], [1], [0, 0, 1, 1], [], []>} : vector<96x128xbf16>, vector<128x256xbf16>, vector<96x256xf32> -> vector<96x256xf32>
    %c0_25 = arith.constant 0 : index
    %c512_26 = arith.constant 512 : index
    %29 = vector.load %arg8[%c0_25, %c512_26] : memref<1x1024xf32, #tpu.memory_space<vmem>>, vector<1x256xf32>
    %cst_27 = arith.constant dense<0xFF800000> : vector<256xf32>
    %30 = vector.multi_reduction <maximumf>, %28, %cst_27 [0] : vector<96x256xf32> to vector<256xf32>
    %31 = vector.shape_cast %30 : vector<256xf32> to vector<1x256xf32>
    %32 = arith.maximumf %29, %31 : vector<1x256xf32>
    %c0_28 = arith.constant 0 : index
    %c512_29 = arith.constant 512 : index
    %33 = vector.load %arg8[%c0_28, %c512_29] : memref<1x1024xf32, #tpu.memory_space<vmem>>, vector<1x256xf32>
    tpu.vector_store %arg8[%c0_28, %c512_29], %32 {strides = array<i32>} : memref<1x1024xf32, #tpu.memory_space<vmem>>, vector<1x256xf32>,
    %c0_30 = arith.constant 0 : index
    %c768 = arith.constant 768 : index
    %34 = vector.load %arg6[%c0_30, %c768] : memref<128x1024xbf16, #tpu.memory_space<vmem>>, vector<128x256xbf16>
    %cst_31 = arith.constant dense<0.000000e+00> : vector<96x256xf32>
    %35 = tpu.matmul %12, %34, %cst_31 {dimension_numbers = #tpu.dot_dimension_numbers<[1], [0], [0], [1], [0, 0, 1, 1], [], []>} : vector<96x128xbf16>, vector<128x256xbf16>, vector<96x256xf32> -> vector<96x256xf32>
    %c0_32 = arith.constant 0 : index
    %c768_33 = arith.constant 768 : index
    %36 = vector.load %arg8[%c0_32, %c768_33] : memref<1x1024xf32, #tpu.memory_space<vmem>>, vector<1x256xf32>
    %cst_34 = arith.constant dense<0xFF800000> : vector<256xf32>
    %37 = vector.multi_reduction <maximumf>, %35, %cst_34 [0] : vector<96x256xf32> to vector<256xf32>
    %38 = vector.shape_cast %37 : vector<256xf32> to vector<1x256xf32>
    %39 = arith.maximumf %36, %38 : vector<1x256xf32>
    %c0_35 = arith.constant 0 : index
    %c768_36 = arith.constant 768 : index
    %40 = vector.load %arg8[%c0_35, %c768_36] : memref<1x1024xf32, #tpu.memory_space<vmem>>, vector<1x256xf32>
    tpu.vector_store %arg8[%c0_35, %c768_36], %39 {strides = array<i32>} : memref<1x1024xf32, #tpu.memory_space<vmem>>, vector<1x256xf32>,
    %c2_i32 = arith.constant 2 : i32
    %41 = arith.cmpi eq, %arg2, %c2_i32 : i32
    %42 = arith.extui %41 : i1 to i32
    %c0_i32_37 = arith.constant 0 : i32
    %43 = arith.cmpi ne, %42, %c0_i32_37 : i32
    scf.if %43 {
      %c0_38 = arith.constant 0 : index
      %c0_39 = arith.constant 0 : index
      %44 = vector.load %arg8[%c0_38, %c0_39] : memref<1x1024xf32, #tpu.memory_space<vmem>>, vector<1x1024xf32>
      %c0_40 = arith.constant 0 : index
      %c0_41 = arith.constant 0 : index
      %c0_42 = arith.constant 0 : index
      %45 = vector.load %arg7[%c0_40, %c0_41, %c0_42] : memref<1x1x1024xf32, #tpu.memory_space<vmem>>, vector<1x1x1024xf32>
      %46 = vector.shape_cast %45 : vector<1x1x1024xf32> to vector<1x1024xf32>
      %47 = vector.shape_cast %44 : vector<1x1024xf32> to vector<1x1x1024xf32>
      tpu.vector_store %arg7[%c0_40, %c0_41, %c0_42], %47 {strides = array<i32>} : memref<1x1x1024xf32, #tpu.memory_space<vmem>>, vector<1x1x1024xf32>,
    } else {
    }
    return
  }
  func.func @transform_0(%arg0: i32, %arg1: i32, %arg2: i32) -> (i32, i32, i32) {
    %c3_i32 = arith.constant 3 : i32
    %0 = arith.muli %arg1, %c3_i32 : i32
    %1 = arith.addi %0, %arg2 : i32
    %c0_i32 = arith.constant 0 : i32
    %c0_i32_0 = arith.constant 0 : i32
    return %arg0, %1, %c0_i32 : i32, i32, i32
  }
  func.func @transform_1(%arg0: i32, %arg1: i32, %arg2: i32) -> (i32, i32) {
    %c0_i32 = arith.constant 0 : i32
    %c0_i32_0 = arith.constant 0 : i32
    %c0_i32_1 = arith.constant 0 : i32
    return %c0_i32, %c0_i32_0 : i32, i32
  }
  func.func @transform_2(%arg0: i32, %arg1: i32, %arg2: i32) -> (i32, i32) {
    %c0_i32 = arith.constant 0 : i32
    %c0_i32_0 = arith.constant 0 : i32
    %c0_i32_1 = arith.constant 0 : i32
    return %c0_i32, %c0_i32_0 : i32, i32
  }
  func.func @transform_3(%arg0: i32, %arg1: i32, %arg2: i32) -> (i32, i32) {
    %c0_i32 = arith.constant 0 : i32
    %c0_i32_0 = arith.constant 0 : i32
    %c0_i32_1 = arith.constant 0 : i32
    return %c0_i32, %c0_i32_0 : i32, i32
  }
  func.func @transform_4(%arg0: i32, %arg1: i32, %arg2: i32) -> (i32, i32, i32) {
    %c0_i32 = arith.constant 0 : i32
    %c0_i32_0 = arith.constant 0 : i32
    return %arg0, %arg1, %c0_i32 : i32, i32, i32
  }
}

</mosaic_0001>

<bundles_post_ra>
// kernel: tpu_custom_call.1
= control target key start
LH: loop header
LB: loop body
LE: loop exit
PB: predicated region body
PF: predicated region fallthrough
CT: control target
= control target key end

     0   :  { %9 = vsyncpa [#allocation4], 0  ;;  %s2315_s0 = inlined_call_operand.vmem [shape: bf16[2,288,64], index: 0, kind: input, shape index: {}]   ;;  %s2316_s1 = inlined_call_operand.vmem [shape: bf16[64,128], index: 1, kind: input, shape index: {}]   ;;  %s2317_s2 = inlined_call_operand.vmem [shape: f32[1,128], index: 2, kind: input, shape index: {}]   ;;  %s2318_s3 = inlined_call_operand.hbm [shape: bf16[128,1024], index: 3, kind: input, shape index: {}]   ;;  %s2319_s4 = inlined_call_operand.hbm [shape: f32[2,1,1024], index: 4, kind: output, shape index: {}]  }
   0x1   :  { %10 = vsyncpa [#allocation5], 0 }
   0x2   :  { %12 = vsyncpa [#allocation5 + $0x1], 0  ;;  %s1966_s15 = smov 0   ;;  %s1968_s16 = smov 0  }
   0x3   :  { %s1970_s17 = smov 0   ;;  %s1972_s18 = smov 0  }
   0x4   :  { %s1974_s19 = smov 0   ;;  %s1976_s20 = smov 0  }
   0x5   :  { %s1978_s21 = smov 0   ;;  %s1980_s22 = smov 0  }
   0x6 LB: > { %s1564_s23 = sadd.s32 4294967295, %s1932_s22   ;;  %s1565_s24 = sadd.s32 4294967294, %s1932_s22   ;;  %s1932_s22 = sphi %s1980_s22, %s18_s22   ;;  %s1928_s21 = sphi %s1978_s21, %s2341_s21   ;;  %s1924_s20 = sphi %s1976_s20, %s2340_s20   ;;  %s1920_s19 = sphi %s1974_s19, %s2339_s19   ;;  %s1916_s18 = sphi %s1972_s18, %s2338_s18   ;;  %s1912_s17 = sphi %s1970_s17, %s2337_s17   ;;  %s1908_s16 = sphi %s1968_s16, %s2336_s16   ;;  %s1904_s15 = sphi %s1966_s15, %s2335_s15  }
   0x7   : > { %s30_s25 = sadd.s32 1, %s1924_s20  ;;  %s37_s26 = sadd.s32 1, %s1928_s21 }
   0x8   : > { %p31_p0 = scmp.ge.s32.totalorder %s30_s25, 3  ;;  %s141_s27 = sadd.s32 1, %s1912_s17 }
   0x9   : > { %p151_p1 = scmp.ne.s32.totalorder %s1912_s17, %s1908_s16  ;;  %p152_p2 = scmp.eq.s32.totalorder %s1564_s23, 5 }
   0xa   : > { %s2343_s25 = smov (%p31_p0, %s30_s25), 0  ;;  %s2345_s26 = smov (!%p31_p0, %s37_s26), %s1928_s21 }
   0xb   : > { %p2016_p3 = por %p152_p2, %p151_p1  ;;  %p157_p4 = scmp.ne.s32.totalorder %s1908_s16, %s1904_s15 }
   0xc   : > { %p39_p5 = scmp.ge.s32.totalorder %s2345_s26, 2  ;;  %p158_p6 = scmp.eq.s32.totalorder %s1565_s24, 5 }
   0xd   : > { %s2324_s28 = scalar_select %p2016_p3, 1, 0 }
   0xe   : > { %p1566_p7 = scmp.ge.s32.totalorder %s1932_s22, 1  ;;  %p165_p8 = scmp.lt.s32.totalorder %s1932_s22, 7 }
   0xf   : > { %s2347_s26 = smov (%p39_p5, %s2345_s26), 0  ;;  %p2026_p9 = por %p158_p6, %p157_p4 }
  0x10   : > { %p2030_p10 = pnand %p1566_p7, %p165_p8  ;;  %s136_s5 = ssub.s32 %s1928_s21, %s2347_s26 }
  0x11   : > { %s2325_s29 = scalar_select %p2026_p9, 1, 0 }
  0x12   : > { %s2326_s30 = scalar_select %p2030_p10, 1, 0 }
  0x13   : > { %p139_p11 = scmp.eq.s32.totalorder %s136_s5, 0  ;;  %p1715_p12 = pneg %p2030_p10 }
  0x14   : > { %p2038_p13 = scmp.eq.s32.totalorder %s1564_s23, 0  ;;  %s1934_s8 = smov [#allocation3]  }
  0x15   : > { %s2043_s7 = scalar_select %p139_p11, %s1912_s17, %s141_s27  }
  0x16   : > { %s2327_s6 = scalar_select %p2038_p13, 1, 0 }
  0x17   : > { %s183_s9 = sshll.u32 %s1934_s8, 4  ;;  %p2047_p0 = pnand %p2038_p13, %p1715_p12  ;;  %s184_s9 = int_to_ptr.vmem [resolvable:$true] %s183_s9 }
  0x18   : > { %s1806_s13 = scalar_lea.hbm %s2318_s3, 8192 }
  0x19   : > { %p1807_p1 = scmp.ne.s32.totalorder %s2318_s3, %s1806_s13  ;;  %p1808_p2 = pneg %p2047_p0 }
  0x1a   : > { %p1813_p6 = scmp.lt.u32.totalorder %s1806_s13, %s2318_s3 }
  0x1b   : > { %p1809_p4 = pnand %p1808_p2, %p1807_p1 }
  0x1d   : > { %p1810_p5 = pneg %p1809_p4 }
  0x1f   : > { %p1815_p7 = pnand %p1813_p6, %p1810_p5 }
  0x21   : > { %1818 = shalt.err (!%p1815_p7)
}
  0x22   : > { %s1819_s5 = scalar_lea.vmem %s184_s9, 8192  ;;  %p1827_p9 = scmp.lt.s32.totalorder %s184_s9, %s184_s9 }
  0x23   : > { %p1820_p8 = scmp.ne.s32.totalorder %s184_s9, %s1819_s5  ;;  %p1828_p3 = scmp.lt.s32.totalorder %s1819_s5, %s1819_s5 }
  0x25   : > { %p1822_p11 = pnand %p1820_p8, %p1808_p2  ;;  %p1829_p13 = por %p1828_p3, %p1827_p9 }
  0x27   : > { %p1823_p12 = pneg %p1822_p11 }
  0x29   : > { %p1830_p10 = pnand %p1829_p13, %p1823_p12 }
  0x2b   : > { %1833 = shalt.err (!%p1830_p10)
}
  0x2c   : > { %s1935_s8 = smov 512   ;;  %s1936_s11 = smov 32  }
  0x2d   : > { %1718 = dma.hbm_to_vmem [thread:$0]  (!%p2047_p0), %s2318_s3, 8192, %s184_s9, [#allocation4], %s1935_s8, %s1935_s8, %s1936_s11  }
  0x2e   : > { %p2329_p1 = scmp.ne.s32.totalorder %s2326_s30, 0 }
  0x2f   : > { %p2330_p4 = scmp.ne.s32.totalorder (!%p2329_p1), %s2327_s6, 0 }
  0x30   : > { %216 = sbr.rel (%p2329_p1) target bundleno = 676 (0x2a4), region = 36 }
  0x37   : > { %1895 = dma.done.wait (%p2330_p4), [#allocation4], 8192  }
  0x38   : > { %1897 = vsyncadd (%p2330_p4), [#allocation4], 4294959104  ;;  %s245_s13 = sand.u32 1, %s1908_s16   ;;  %s250_s10 = smul.u32 12, %s1916_s18 }
  0x39   : > { %s2077_s23 = sshll.u32 %s245_s13, 3  ;;  %p251_p3 = scmp.lt.s32.totalorder %s1920_s19, 1 }
  0x3a   : > { %p253_p9 = scmp.lt.s32.totalorder %s250_s10, 35  ;;  %s247_s11 = scalar_lea.vmem [#allocation6], %s2077_s23 }
  0x3b   : > { %s252_s30 = scalar_select %p251_p3, %s1920_s19, 1 }
  0x3c   : > { %s2349_s10 = smov (!%p253_p9, %s250_s10), 35  ;;  %p1573_p10 = scmp.ne.s32.totalorder %s1916_s18, 0 }
  0x3d   : > { %s1708_s9 = smul.u32 36, %s252_s30  ;;  %v1937_v0 = vmov (!%p1573_p10), -inf  }
  0x3e   : > { %266 = sbr.rel (%p1573_p10) target bundleno = 69 (0x45), region = 44  ;;  %267 = vst [vmem:[#allocation2] sm:$0xff] (!%p1573_p10), %v1937_v0 }
  0x3f   : > { %s256_s24 = sadd.s32 %s1708_s9, %s2349_s10 }
  0x40   : > { %s1572_s27 = sshll.u32 %s256_s24, 2 }
  0x41   : > { %s2084_s8 = scalar_lea.vmem %s2315_s0, %s1572_s27 }
  0x45 PF: > { %v1796_v1 = vld [vmem:[%s2316_s1] sm:$0xff]   ;;  %v1797_v2 = vld [vmem:[%s2316_s1 + $0x8] sm:$0xff]   ;;  %v1798_v3 = vld [vmem:[%s2316_s1 + $0x10] sm:$0xff]   ;;  %vm349_vm0 = vcmask 523264   ;;  %p1655_p13 = scmp.ne.s32.totalorder %s1916_s18, 2 }
  0x46   : > { %1672 = vmatprep.subr.bf16.mxu0 %v1796_v1  ;;  %v1800_v4 = vld [vmem:[%s2084_s8] sm:$0xff]   ;;  %v1799_v5 = vld [vmem:[%s2316_s1 + $0x18] sm:$0xff]   ;;  %v467_v6 = vld [vmem:[#allocation3] sm:$0xff] }
  0x47   : > { %1673 = vmatpush3.bf16.msra.mxu0 %v1796_v1  ;;  %1680 = vmatprep.mubr.msk.bf16.mxu0 %vm349_vm0, %v1800_v4  ;;  %v468_v7 = vld [vmem:[#allocation3 + $0x20] sm:$0xff]  ;;  %v715_v8 = vld [vmem:[#allocation3 + $0x8] sm:$0xff]  ;;  %v1803_v38 = vld [vmem:[%s2084_s8 + $0x18] sm:$0xff]  }
  0x48   : > { %1674 = vmatprep.subr.bf16.mxu0 %v1797_v2  ;;  %v1592_v9 = vcombine.high %v467_v6, %v468_v7  ;;  %v1591_v10 = vcombine.low %v467_v6, %v468_v7  ;;  %v716_v11 = vld [vmem:[#allocation3 + $0x28] sm:$0xff]  ;;  %v469_v12 = vld [vmem:[#allocation3 + $0x40] sm:$0xff]  ;;  %v1804_v40 = vld [vmem:[%s2084_s8 + $0x20] sm:$0xff]  }
  0x49   : > { %v470_v13 = vld [vmem:[#allocation3 + $0x60] sm:$0xff]  ;;  %v1608_v14 = vcombine.high %v715_v8, %v716_v11  ;;  %v717_v16 = vld [vmem:[#allocation3 + $0x48] sm:$0xff]  ;;  %v1607_v23 = vcombine.low %v715_v8, %v716_v11  ;;  %v959_v11 = vld [vmem:[#allocation3 + $0x10] sm:$0xff] }
  0x4a   : > { %v1594_v15 = vcombine.high %v469_v12, %v470_v13  ;;  %563 = vmatprep.subr.bf16.mxu1 %v1592_v9  ;;  %v718_v17 = vld [vmem:[#allocation3 + $0x68] sm:$0xff]  ;;  %v471_v18 = vld [vmem:[#allocation3 + $0x80] sm:$0xff]  ;;  %v1593_v21 = vcombine.low %v469_v12, %v470_v13  ;;  %v960_v12 = vld [vmem:[#allocation3 + $0x30] sm:$0xff]  ;;  %v1938_v13 = vmov 0  }
  0x4b   : > { %1675 = vmatpush3.bf16.msra.mxu0 %v1797_v2  ;;  %v472_v19 = vld [vmem:[#allocation3 + $0xa0] sm:$0xff]  ;;  %564 = vmatpush1.bf16.msra.mxu1 %v1591_v10  ;;  %v1802_v22 = vld [vmem:[%s2084_s8 + $0x10] sm:$0xff]   ;;  %v1610_v24 = vcombine.high %v717_v16, %v718_v17  ;;  %v1609_v31 = vcombine.low %v717_v16, %v718_v17  ;;  %v1203_v16 = vld [vmem:[#allocation3 + $0x18] sm:$0xff] }
  0x4c   : > { %1676 = vmatprep.subr.bf16.mxu0 %v1798_v3  ;;  %v1801_v20 = vld [vmem:[%s2084_s8 + $0x8] sm:$0xff]   ;;  %565 = vmatprep.subr.bf16.mxu1 %v1594_v15  ;;  %v1596_v25 = vcombine.high %v471_v18, %v472_v19  ;;  %v719_v28 = vld [vmem:[#allocation3 + $0x88] sm:$0xff]  ;;  %v1595_v30 = vcombine.low %v471_v18, %v472_v19  ;;  %v1624_v15 = vcombine.high %v959_v11, %v960_v12  ;;  %v1204_v17 = vld [vmem:[#allocation3 + $0x38] sm:$0xff] }
  0x4d   : > { %v473_v26 = vld [vmem:[#allocation3 + $0xc0] sm:$0xff]  ;;  %v720_v29 = vld [vmem:[#allocation3 + $0xa8] sm:$0xff]  ;;  %595 = vmatprep.mubr.bf16.mxu1 %v1938_v13  ;;  %v2114_v18 = vcombine.low %v1203_v16, %v1204_v17  ;;  %v2116_v19 = vcombine.high %v1203_v16, %v1204_v17 }
  0x4e   : > { %v474_v27 = vld [vmem:[#allocation3 + $0xe0] sm:$0xff]  ;;  %v1612_v33 = vcombine.high %v719_v28, %v720_v29  ;;  %v721_v34 = vld [vmem:[#allocation3 + $0xc8] sm:$0xff]  ;;  %v1611_v41 = vcombine.low %v719_v28, %v720_v29 }
  0x4f   : > { %1677 = vmatpush3.bf16.msra.mxu0 %v1798_v3  ;;  %566 = vmatpush1.bf16.msra.mxu1 %v1593_v21  ;;  %v1598_v32 = vcombine.high %v473_v26, %v474_v27  ;;  %v722_v35 = vld [vmem:[#allocation3 + $0xe8] sm:$0xff]  ;;  %v475_v36 = vld [vmem:[#allocation3 + $0x100] sm:$0xff]  ;;  %v1597_v39 = vcombine.low %v473_v26, %v474_v27 }
  0x50   : > { %1678 = vmatprep.subr.bf16.mxu0 %v1799_v5  ;;  %567 = vmatprep.subr.bf16.mxu1 %v1596_v25  ;;  %v476_v37 = vld [vmem:[#allocation3 + $0x120] sm:$0xff]  ;;  %v1614_v42 = vcombine.high %v721_v34, %v722_v35  ;;  %v723_v46 = vld [vmem:[#allocation3 + $0x108] sm:$0xff]  ;;  %v1613_v49 = vcombine.low %v721_v34, %v722_v35 }
  0x51   : > { %v1600_v43 = vcombine.high %v475_v36, %v476_v37  ;;  %v477_v44 = vld [vmem:[#allocation3 + $0x140] sm:$0xff]  ;;  %v724_v47 = vld [vmem:[#allocation3 + $0x128] sm:$0xff]  ;;  %v1599_v48 = vcombine.low %v475_v36, %v476_v37  ;;  %v1205_v36 = vld [vmem:[#allocation3 + $0x58] sm:$0xff] }
  0x52   : > { %v478_v45 = vld [vmem:[#allocation3 + $0x160] sm:$0xff]  ;;  %v1616_v51 = vcombine.high %v723_v46, %v724_v47  ;;  %v725_v52 = vld [vmem:[#allocation3 + $0x148] sm:$0xff]  ;;  %v1615_v56 = vcombine.low %v723_v46, %v724_v47  ;;  %v1206_v37 = vld [vmem:[#allocation3 + $0x78] sm:$0xff] }
  0x53   : > { %1679 = vmatpush3.bf16.msra.mxu0 %v1799_v5  ;;  %568 = vmatpush1.bf16.msra.mxu1 %v1595_v30  ;;  %v1602_v50 = vcombine.high %v477_v44, %v478_v45  ;;  %v726_v53 = vld [vmem:[#allocation3 + $0x168] sm:$0xff]  ;;  %v1805_v54 = vld [vmem:[%s2084_s8 + $0x28] sm:$0xff]   ;;  %v1601_v55 = vcombine.low %v477_v44, %v478_v45  ;;  %v964_v44 = vld [vmem:[#allocation3 + $0xb0] sm:$0xff]  ;;  %v2136_v47 = vcombine.high %v1205_v36, %v1206_v37 }
  0x54   : > { %811 = vmatprep.subr.bf16.mxu0 %v1608_v14  ;;  %569 = vmatprep.subr.bf16.mxu1 %v1598_v32  ;;  %v1618_v57 = vcombine.high %v725_v52, %v726_v53  ;;  %v1617_v58 = vcombine.low %v725_v52, %v726_v53  ;;  %v479_v59 = vld [vmem:[#allocation3 + $0x180] sm:$0xff]  ;;  %v727_v61 = vld [vmem:[#allocation3 + $0x188] sm:$0xff]  ;;  %v1623_v14 = vcombine.low %v959_v11, %v960_v12  ;;  %v962_v32 = vld [vmem:[#allocation3 + $0x70] sm:$0xff] }
  0x55   : > { %v480_v60 = vld [vmem:[#allocation3 + $0x1a0] sm:$0xff]  ;;  %v728_v63 = vld [vmem:[#allocation3 + $0x1a8] sm:$0xff] }
  0x56   : > { %1681 = vmatmul.mubr.msk.bf16.vlgmr.msra.gmra.mrb[0].mxu0 %vm349_vm0, %v1801_v20  ;;  %v1604_v62 = vcombine.high %v479_v59, %v480_v60  ;;  %v1603_v0 = vcombine.low %v479_v59, %v480_v60  ;;  %v1619_v1 = vcombine.low %v727_v61, %v728_v63  ;;  %v1620_v2 = vcombine.high %v727_v61, %v728_v63  ;;  %v481_v3 = vld [vmem:[#allocation3 + $0x1c0] sm:$0xff]  ;;  %v729_v5 = vld [vmem:[#allocation3 + $0x1c8] sm:$0xff]  ;;  %v2122_v20 = vld [vmem:[%s2317_s2] ss:$0 sm:$0xff] }
  0x57   : > { %1684 = vmatprep.mubr.msk.bf16.mxu0 %vm349_vm0, %v1802_v22  ;;  %812 = vmatpush1.bf16.msra.mxu0 %v1607_v23  ;;  %v482_v4 = vld [vmem:[#allocation3 + $0x1e0] sm:$0xff]  ;;  %v730_v7 = vld [vmem:[#allocation3 + $0x1e8] sm:$0xff]  ;;  %v1207_v60 = vld [vmem:[#allocation3 + $0x98] sm:$0xff] }
  0x58   : > { %813 = vmatprep.subr.bf16.mxu0 %v1610_v24  ;;  %570 = vmatpush1.bf16.msra.mxu1 %v1597_v39  ;;  %v1606_v6 = vcombine.high %v481_v3, %v482_v4  ;;  %v1605_v8 = vcombine.low %v481_v3, %v482_v4  ;;  %v1621_v9 = vcombine.low %v729_v5, %v730_v7  ;;  %v1208_v61 = vld [vmem:[#allocation3 + $0xb8] sm:$0xff] }
  0x59   : > { %571 = vmatprep.subr.bf16.mxu1 %v1600_v43  ;;  %v1622_v10 = vcombine.high %v729_v5, %v730_v7  ;;  %v963_v43 = vld [vmem:[#allocation3 + $0x90] sm:$0xff]  ;;  %v1209_v3 = vld [vmem:[#allocation3 + $0xd8] sm:$0xff]  ;;  %v2157_v12 = vcombine.low %v1207_v60, %v1208_v61 }
  0x5a   : > { %v1627_v63 = vcombine.low %v963_v43, %v964_v44  ;;  %v1210_v4 = vld [vmem:[#allocation3 + $0xf8] sm:$0xff]  ;;  %v967_v7 = vld [vmem:[#allocation3 + $0x110] sm:$0xff] }
  0x5b   : > { %814 = vmatpush1.bf16.msra.mxu0 %v1609_v31  ;;  %v961_v31 = vld [vmem:[#allocation3 + $0x50] sm:$0xff] }
  0x5c   : > { %815 = vmatprep.subr.bf16.mxu0 %v1612_v33  ;;  %572 = vmatpush1.bf16.msra.mxu1 %v1599_v48 }
  0x5d   : > { %573 = vmatprep.subr.bf16.mxu1 %v1602_v50  ;;  %v1625_v50 = vcombine.low %v961_v31, %v962_v32 }
  0x5e   : > { %1685 = vmatmul.mubr.msk.bf16.gmra.mrb[4].mxu0 %vm349_vm0, %v1803_v38 }
  0x5f   : > { %1688 = vmatprep.mubr.msk.bf16.mxu0 %vm349_vm0, %v1804_v40  ;;  %816 = vmatpush1.bf16.msra.mxu0 %v1611_v41  ;;  %v1626_v40 = vcombine.high %v961_v31, %v962_v32 }
  0x60   : > { %817 = vmatprep.subr.bf16.mxu0 %v1614_v42  ;;  %574 = vmatpush1.bf16.msra.mxu1 %v1601_v55 }
  0x61   : > { %575 = vmatprep.subr.bf16.mxu1 %v1604_v62 }
  0x63   : > { %818 = vmatpush1.bf16.msra.mxu0 %v1613_v49 }
  0x64   : > { %819 = vmatprep.subr.bf16.mxu0 %v1616_v51  ;;  %576 = vmatpush1.bf16.msra.mxu1 %v1603_v0 }
  0x65   : > { %577 = vmatprep.subr.bf16.mxu1 %v1606_v6 }
  0x66   : > { %1689 = vmatmul.mubr.msk.bf16.gmra.mrb[8].mxu0 %vm349_vm0, %v1805_v54  ;;  %v1628_v54 = vcombine.high %v963_v43, %v964_v44 }
  0x67   : > { %820 = vmatpush1.bf16.msra.mxu0 %v1615_v56  ;;  %843 = vmatprep.mubr.bf16.mxu0 %v1938_v13  ;;  %v965_v56 = vld [vmem:[#allocation3 + $0xd0] sm:$0xff] }
  0x68   : > { %821 = vmatprep.subr.bf16.mxu0 %v1618_v57  ;;  %578 = vmatpush1.bf16.msra.mxu1 %v1605_v8  ;;  %v966_v57 = vld [vmem:[#allocation3 + $0xf0] sm:$0xff] }
  0x69   : > { %1055 = vmatprep.subr.bf16.mxu1 %v1624_v15  ;;  %v968_v8 = vld [vmem:[#allocation3 + $0x130] sm:$0xff] }
  0x6b   : > { %822 = vmatpush1.bf16.msra.mxu0 %v1617_v58  ;;  %v2143_v58 = vcombine.low %v1205_v36, %v1206_v37  ;;  %v971_v37 = vld [vmem:[#allocation3 + $0x190] sm:$0xff] }
  0x6c   : > { %823 = vmatprep.subr.bf16.mxu0 %v1620_v2 }
  0x6f   : > { %824 = vmatpush1.bf16.msra.mxu0 %v1619_v1  ;;  %v1630_v1 = vcombine.high %v965_v56, %v966_v57 }
  0x70   : > { %825 = vmatprep.subr.bf16.mxu0 %v1622_v10 }
  0x73   : > { %826 = vmatpush1.bf16.msra.mxu0 %v1621_v9  ;;  %v2152_v9 = vcombine.high %v1207_v60, %v1208_v61 }
  0x74   : > { %1299 = vmatprep.subr.bf16.mxu0 %v2116_v19 }
 0x129   : > { %v1682_v21 = vpop.f32.mrb[0].mxu0 }
 0x12a   : > { %v411_v22 = vadd.f32 %v1682_v21, %v2122_v20  ;;  %v402_v23 = vpop.f32.mrb[1].mxu0  ;;  %v2161_v21 = vcombine.high %v1209_v3, %v1210_v4 }
 0x12b   : > { %v403_v24 = vadd.f32 %v2122_v20, %v402_v23  ;;  %v1683_v25 = vpop.f32.mrb[2].mxu0 }
 0x12c   : > { %v414_v26 = vadd.f32 %v1683_v25, %v2122_v20  ;;  %v405_v27 = vpop.f32.mrb[3].mxu0  ;;  %v451_v29 = vmax.f32 %v411_v22, 0.0 }
 0x12d   : > { %v406_v28 = vadd.f32 %v2122_v20, %v405_v27  ;;  %v449_v33 = vmax.f32 %v403_v24, 0.0  ;;  %v1632_v24 = vcombine.high %v967_v7, %v968_v8 }
 0x12e   : > { %v452_v30 = vmax.f32 %v414_v26, 0.0  ;;  %v969_v26 = vld [vmem:[#allocation3 + $0x150] sm:$0xff] }
 0x12f   : > { %v450_v34 = vmax.f32 %v406_v28, 0.0  ;;  %v970_v28 = vld [vmem:[#allocation3 + $0x170] sm:$0xff] }
 0x130   : > { %v2128_v35 = vpack.c.bf16 %v452_v30, %v451_v29  ;;  %v1211_v29 = vld [vmem:[#allocation3 + $0x118] sm:$0xff] }
 0x131   : > { %v2130_v38 = vpack.c.bf16 %v450_v34, %v449_v33  ;;  %v1686_v39 = vpop.f32.mrb[4].mxu0  ;;  %v1212_v30 = vld [vmem:[#allocation3 + $0x138] sm:$0xff]  ;;  %v1631_v33 = vcombine.low %v967_v7, %v968_v8  ;;  %v1634_v34 = vcombine.high %v969_v26, %v970_v28 }
 0x132   : > { %v427_v41 = vadd.f32 %v1686_v39, %v2122_v20  ;;  %v418_v42 = vpop.f32.mrb[5].mxu0  ;;  %v2174_v36 = vcombine.high %v1211_v29, %v1212_v30  ;;  %v972_v39 = vld [vmem:[#allocation3 + $0x1b0] sm:$0xff]  ;;  %v2181_v43 = vcombine.low %v1211_v29, %v1212_v30 }
 0x133   : > { %596 = vmatmul.mubr.bf16.vlgmr.msra.gmra.mrb[0].mxu1 %v2130_v38  ;;  %844 = vmatmul.mubr.bf16.vlgmr.msra.gmra.mrb[12].mxu0 %v2130_v38  ;;  %v419_v45 = vadd.f32 %v2122_v20, %v418_v42  ;;  %v1687_v46 = vpop.f32.mrb[6].mxu0  ;;  %v1633_v42 = vcombine.low %v969_v26, %v970_v28  ;;  %v1636_v44 = vcombine.high %v971_v37, %v972_v39 }
 0x134   : > { %1056 = vmatpush1.bf16.msra.mxu1 %v1623_v14  ;;  %v455_v48 = vmax.f32 %v427_v41, 0.0  ;;  %v430_v49 = vadd.f32 %v1687_v46, %v2122_v20  ;;  %v421_v51 = vpop.f32.mrb[7].mxu0  ;;  %605 = vmatprep.mubr.bf16.mxu1 %v1938_v13  ;;  %v1629_v14 = vcombine.low %v965_v56, %v966_v57  ;;  %v1214_v41 = vld [vmem:[#allocation3 + $0x178] sm:$0xff] }
 0x135   : > { %v453_v52 = vmax.f32 %v419_v45, 0.0  ;;  %1057 = vmatprep.subr.bf16.mxu1 %v1626_v40  ;;  %v422_v53 = vadd.f32 %v2122_v20, %v421_v51  ;;  %853 = vmatprep.mubr.bf16.mxu0 %v1938_v13  ;;  %v1213_v40 = vld [vmem:[#allocation3 + $0x158] sm:$0xff]  ;;  %v1635_v51 = vcombine.low %v971_v37, %v972_v39 }
 0x136   : > { %v456_v55 = vmax.f32 %v430_v49, 0.0  ;;  %1300 = vmatpush1.bf16.msra.mxu0 %v2114_v18  ;;  %v1650_v45 = vcombine.high %v1213_v40, %v1214_v41  ;;  %v1215_v46 = vld [vmem:[#allocation3 + $0x198] sm:$0xff]  ;;  %v973_v49 = vld [vmem:[#allocation3 + $0x1d0] sm:$0xff] }
 0x137   : > { %v454_v59 = vmax.f32 %v422_v53, 0.0  ;;  %1301 = vmatprep.subr.bf16.mxu0 %v2136_v47  ;;  %v1218_v56 = vld [vmem:[#allocation3 + $0x1f8] sm:$0xff] }
 0x138   : > { %v2146_v62 = vpack.c.bf16 %v456_v55, %v455_v48  ;;  %1058 = vmatpush1.bf16.msra.mxu1 %v1625_v50  ;;  %v1216_v48 = vld [vmem:[#allocation3 + $0x1b8] sm:$0xff]  ;;  %v974_v50 = vld [vmem:[#allocation3 + $0x1f0] sm:$0xff] }
 0x139   : > { %v2148_v0 = vpack.c.bf16 %v454_v59, %v453_v52  ;;  %1059 = vmatprep.subr.bf16.mxu1 %v1628_v54  ;;  %v1690_v2 = vpop.f32.mrb[8].mxu0  ;;  %v1649_v52 = vcombine.low %v1213_v40, %v1214_v41  ;;  %v1652_v53 = vcombine.high %v1215_v46, %v1216_v48  ;;  %v1638_v54 = vcombine.high %v973_v49, %v974_v50  ;;  %v1217_v55 = vld [vmem:[#allocation3 + $0x1d8] sm:$0xff] }
 0x13a   : > { %v443_v5 = vadd.f32 %v1690_v2, %v2122_v20  ;;  %v434_v6 = vpop.f32.mrb[9].mxu0  ;;  %1302 = vmatpush1.bf16.msra.mxu0 %v2143_v58  ;;  %v1651_v57 = vcombine.low %v1215_v46, %v1216_v48  ;;  %v1637_v59 = vcombine.low %v973_v49, %v974_v50  ;;  %v1654_v60 = vcombine.high %v1217_v55, %v1218_v56 }
 0x13b   : > { %606 = vmatmul.mubr.bf16.gmra.mrb[4].mxu1 %v2128_v35  ;;  %854 = vmatmul.mubr.bf16.gmra.mrb[16].mxu0 %v2128_v35  ;;  %v435_v10 = vadd.f32 %v2122_v20, %v434_v6  ;;  %v1691_v11 = vpop.f32.mrb[10].mxu0  ;;  %v1653_v61 = vcombine.low %v1217_v55, %v1218_v56 }
 0x13c   : > { %1060 = vmatpush1.bf16.msra.mxu1 %v1627_v63  ;;  %615 = vmatprep.mubr.bf16.mxu1 %v1938_v13  ;;  %v459_v15 = vmax.f32 %v443_v5, 0.0  ;;  %v446_v16 = vadd.f32 %v1691_v11, %v2122_v20  ;;  %v437_v17 = vpop.f32.mrb[11].mxu0 }
 0x13d   : > { %863 = vmatprep.mubr.bf16.mxu0 %v1938_v13  ;;  %1061 = vmatprep.subr.bf16.mxu1 %v1630_v1  ;;  %v457_v22 = vmax.f32 %v435_v10, 0.0  ;;  %v438_v23 = vadd.f32 %v2122_v20, %v437_v17  ;;  %v2172_v20 = vcombine.low %v1209_v3, %v1210_v4 }
 0x13e   : > { %v460_v25 = vmax.f32 %v446_v16, 0.0  ;;  %1303 = vmatprep.subr.bf16.mxu0 %v2152_v9 }
 0x13f   : > { %v458_v27 = vmax.f32 %v438_v23, 0.0  ;;  %1304 = vmatpush1.bf16.msra.mxu0 %v2157_v12 }
 0x140   : > { %1062 = vmatpush1.bf16.msra.mxu1 %v1629_v14  ;;  %v2167_v31 = vpack.c.bf16 %v460_v25, %v459_v15  ;;  %1305 = vmatprep.subr.bf16.mxu0 %v2161_v21 }
 0x141   : > { %v2170_v32 = vpack.c.bf16 %v458_v27, %v457_v22  ;;  %1063 = vmatprep.subr.bf16.mxu1 %v1632_v24 }
 0x143   : > { %616 = vmatmul.mubr.bf16.gmra.mrb[8].mxu1 %v2148_v0  ;;  %864 = vmatmul.mubr.bf16.gmra.mrb[20].mxu0 %v2148_v0 }
 0x144   : > { %625 = vmatprep.mubr.bf16.mxu1 %v1938_v13  ;;  %873 = vmatprep.mubr.bf16.mxu0 %v1938_v13 }
 0x145   : > { %1064 = vmatpush1.bf16.msra.mxu1 %v1631_v33  ;;  %1306 = vmatpush1.bf16.msra.mxu0 %v2172_v20 }
 0x146   : > { %1065 = vmatprep.subr.bf16.mxu1 %v1634_v34  ;;  %1307 = vmatprep.subr.bf16.mxu0 %v2174_v36 }
 0x149   : > { %1066 = vmatpush1.bf16.msra.mxu1 %v1633_v42  ;;  %1308 = vmatpush1.bf16.msra.mxu0 %v2181_v43 }
 0x14a   : > { %1067 = vmatprep.subr.bf16.mxu1 %v1636_v44  ;;  %1309 = vmatprep.subr.bf16.mxu0 %v1650_v45 }
 0x14b   : > { %626 = vmatmul.mubr.bf16.gmra.mrb[12].mxu1 %v2146_v62  ;;  %874 = vmatmul.mubr.bf16.gmra.mrb[24].mxu0 %v2146_v62 }
 0x14c   : > { %635 = vmatprep.mubr.bf16.mxu1 %v1938_v13  ;;  %883 = vmatprep.mubr.bf16.mxu0 %v1938_v13 }
 0x14d   : > { %1068 = vmatpush1.bf16.msra.mxu1 %v1635_v51  ;;  %1310 = vmatpush1.bf16.msra.mxu0 %v1649_v52 }
 0x14e   : > { %1311 = vmatprep.subr.bf16.mxu0 %v1652_v53  ;;  %1069 = vmatprep.subr.bf16.mxu1 %v1638_v54 }
 0x151   : > { %1312 = vmatpush1.bf16.msra.mxu0 %v1651_v57  ;;  %1070 = vmatpush1.bf16.msra.mxu1 %v1637_v59 }
 0x152   : > { %1313 = vmatprep.subr.bf16.mxu0 %v1654_v60  ;;  %1692 = vmatprep.subr.bf16.mxu1 %v2116_v19 }
 0x153   : > { %636 = vmatmul.mubr.bf16.gmra.mrb[16].mxu1 %v2170_v32  ;;  %884 = vmatmul.mubr.bf16.gmra.mrb[28].mxu0 %v2170_v32 }
 0x154   : > { %645 = vmatprep.mubr.bf16.mxu1 %v1938_v13  ;;  %893 = vmatprep.mubr.bf16.mxu0 %v1938_v13 }
 0x155   : > { %1314 = vmatpush1.bf16.msra.mxu0 %v1653_v61 }
 0x15b   : > { %646 = vmatmul.mubr.bf16.gmra.mrb[20].mxu1 %v2167_v31  ;;  %894 = vmatmul.mubr.bf16.gmra.mrb[32].mxu0 %v2167_v31 }
 0x15c   : > { %1087 = vmatprep.mubr.bf16.mxu1 %v1938_v13  ;;  %1331 = vmatprep.mubr.bf16.mxu0 %v1938_v13 }
 0x163   : > { %1088 = vmatmul.mubr.bf16.vlgmr.msra.gmra.mrb[24].mxu1 %v2130_v38  ;;  %1332 = vmatmul.mubr.bf16.vlgmr.msra.gmra.mrb[36].mxu0 %v2130_v38 }
 0x164   : > { %1700 = vmatpush1.bf16.msra.mxu1 %v2114_v18  ;;  %1097 = vmatprep.mubr.bf16.mxu1 %v1938_v13 }
 0x165   : > { %1693 = vmatprep.subr.bf16.mxu1 %v2136_v47  ;;  %1341 = vmatprep.mubr.bf16.mxu0 %v1938_v13 }
 0x168   : > { %1701 = vmatpush1.bf16.msra.mxu1 %v2143_v58 }
 0x169   : > { %1694 = vmatprep.subr.bf16.mxu1 %v2152_v9 }
 0x16b   : > { %1098 = vmatmul.mubr.bf16.gmra.mrb[28].mxu1 %v2128_v35  ;;  %1342 = vmatmul.mubr.bf16.gmra.mrb[40].mxu0 %v2128_v35 }
 0x16c   : > { %1702 = vmatpush1.bf16.msra.mxu1 %v2157_v12  ;;  %1107 = vmatprep.mubr.bf16.mxu1 %v1938_v13 }
 0x16d   : > { %1351 = vmatprep.mubr.bf16.mxu0 %v1938_v13  ;;  %1695 = vmatprep.subr.bf16.mxu1 %v2161_v21 }
 0x170   : > { %1703 = vmatpush1.bf16.msra.mxu1 %v2172_v20 }
 0x171   : > { %1696 = vmatprep.subr.bf16.mxu1 %v2174_v36 }
 0x173   : > { %1108 = vmatmul.mubr.bf16.gmra.mrb[32].mxu1 %v2148_v0  ;;  %1352 = vmatmul.mubr.bf16.gmra.mrb[44].mxu0 %v2148_v0 }
 0x174   : > { %1117 = vmatprep.mubr.bf16.mxu1 %v1938_v13  ;;  %1361 = vmatprep.mubr.bf16.mxu0 %v1938_v13 }
 0x175   : > { %1704 = vmatpush1.bf16.msra.mxu1 %v2181_v43 }
 0x176   : > { %1697 = vmatprep.subr.bf16.mxu1 %v1650_v45 }
 0x179   : > { %1705 = vmatpush1.bf16.msra.mxu1 %v1649_v52 }
 0x17a   : > { %1698 = vmatprep.subr.bf16.mxu1 %v1652_v53 }
 0x17b   : > { %1118 = vmatmul.mubr.bf16.gmra.mrb[36].mxu1 %v2146_v62  ;;  %1362 = vmatmul.mubr.bf16.gmra.mrb[48].mxu0 %v2146_v62 }
 0x17c   : > { %1127 = vmatprep.mubr.bf16.mxu1 %v1938_v13  ;;  %1371 = vmatprep.mubr.bf16.mxu0 %v1938_v13 }
 0x17d   : > { %1706 = vmatpush1.bf16.msra.mxu1 %v1651_v57 }
 0x17e   : > { %1699 = vmatprep.subr.bf16.mxu1 %v1654_v60 }
 0x181   : > { %1707 = vmatpush1.bf16.msra.mxu1 %v1653_v61 }
 0x183   : > { %1128 = vmatmul.mubr.bf16.gmra.mrb[40].mxu1 %v2170_v32  ;;  %1372 = vmatmul.mubr.bf16.gmra.mrb[52].mxu0 %v2170_v32 }
 0x184   : > { %1137 = vmatprep.mubr.bf16.mxu1 %v1938_v13 }
 0x18b   : > { %1138 = vmatmul.mubr.bf16.gmra.mrb[44].mxu1 %v2167_v31 }
 0x18c   : > { %1381 = vmatprep.mubr.bf16.mxu1 %v1938_v13 }
 0x193   : > { %1382 = vmatmul.mubr.bf16.vlgmr.msra.gmra.mrb[48].mxu1 %v2167_v31 }
 0x206   : > { %v597_v18 = vpop.f32.mrb[0].mxu1  ;;  %v845_v19 = vpop.f32.mrb[12].mxu0 }
 0x207   : > { %v599_v35 = vpop.f32.mrb[1].mxu1  ;;  %v847_v38 = vpop.f32.mrb[13].mxu0 }
 0x208   : > { %v601_v47 = vpop.f32.mrb[2].mxu1  ;;  %v849_v58 = vpop.f32.mrb[14].mxu0 }
 0x209   : > { %v603_v62 = vpop.f32.mrb[3].mxu1  ;;  %v851_v63 = vpop.f32.mrb[15].mxu0 }
 0x20e   : > { %v607_v0 = vpop.f32.mrb[4].mxu1  ;;  %v855_v1 = vpop.f32.mrb[16].mxu0 }
 0x20f   : > { %v657_v2 = vmax.f32 %v597_v18, %v607_v0  ;;  %v905_v3 = vmax.f32 %v845_v19, %v855_v1  ;;  %v609_v4 = vpop.f32.mrb[5].mxu1  ;;  %v857_v5 = vpop.f32.mrb[17].mxu0 }
 0x210   : > { %v674_v6 = vmax.f32 %v599_v35, %v609_v4  ;;  %v922_v7 = vmax.f32 %v847_v38, %v857_v5  ;;  %v611_v8 = vpop.f32.mrb[6].mxu1  ;;  %v859_v13 = vpop.f32.mrb[18].mxu0 }
 0x211   : > { %v658_v9 = vmax.f32 %v601_v47, %v611_v8  ;;  %v906_v10 = vmax.f32 %v849_v58, %v859_v13  ;;  %v613_v11 = vpop.f32.mrb[7].mxu1  ;;  %v861_v12 = vpop.f32.mrb[19].mxu0 }
 0x212   : > { %v675_v14 = vmax.f32 %v603_v62, %v613_v11  ;;  %v923_v15 = vmax.f32 %v851_v63, %v861_v12 }
 0x216   : > { %v617_v16 = vpop.f32.mrb[8].mxu1  ;;  %v865_v17 = vpop.f32.mrb[20].mxu0 }
 0x217   : > { %v659_v21 = vmax.f32 %v657_v2, %v617_v16  ;;  %v907_v22 = vmax.f32 %v905_v3, %v865_v17  ;;  %v619_v23 = vpop.f32.mrb[9].mxu1  ;;  %v867_v24 = vpop.f32.mrb[21].mxu0 }
 0x218   : > { %v676_v25 = vmax.f32 %v674_v6, %v619_v23  ;;  %v924_v26 = vmax.f32 %v922_v7, %v867_v24  ;;  %v621_v27 = vpop.f32.mrb[10].mxu1  ;;  %v869_v28 = vpop.f32.mrb[22].mxu0 }
 0x219   : > { %v660_v29 = vmax.f32 %v658_v9, %v621_v27  ;;  %v908_v30 = vmax.f32 %v906_v10, %v869_v28  ;;  %v623_v31 = vpop.f32.mrb[11].mxu1  ;;  %v871_v32 = vpop.f32.mrb[23].mxu0  ;;  %v697_v28 = vlaneseq }
 0x21a   : > { %v677_v33 = vmax.f32 %v675_v14, %v623_v31  ;;  %v925_v20 = vmax.f32 %v923_v15, %v871_v32 }
 0x21b   : > { %vm2241_vm1 = vcmp.lt.s32.totalorder %v697_v28, 256 }
 0x21e   : > { %v627_v34 = vpop.f32.mrb[12].mxu1  ;;  %v875_v36 = vpop.f32.mrb[24].mxu0 }
 0x21f   : > { %v661_v37 = vmax.f32 %v659_v21, %v627_v34  ;;  %v909_v39 = vmax.f32 %v907_v22, %v875_v36  ;;  %v629_v40 = vpop.f32.mrb[13].mxu1  ;;  %v877_v41 = vpop.f32.mrb[25].mxu0 }
 0x220   : > { %v678_v42 = vmax.f32 %v676_v25, %v629_v40  ;;  %v926_v43 = vmax.f32 %v924_v26, %v877_v41  ;;  %v631_v44 = vpop.f32.mrb[14].mxu1  ;;  %v879_v45 = vpop.f32.mrb[26].mxu0  ;;  %v1939_v26 = vmov 1966171168  }
 0x221   : > { %v662_v46 = vmax.f32 %v660_v29, %v631_v44  ;;  %v910_v48 = vmax.f32 %v908_v30, %v879_v45  ;;  %v633_v49 = vpop.f32.mrb[15].mxu1  ;;  %v881_v50 = vpop.f32.mrb[27].mxu0  ;;  %v695_v27 = vunpack.c.l.s4 %v1939_v26 }
 0x222   : > { %v679_v51 = vmax.f32 %v677_v33, %v633_v49  ;;  %v927_v52 = vmax.f32 %v925_v20, %v881_v50 }
 0x226   : > { %v637_v53 = vpop.f32.mrb[16].mxu1  ;;  %v885_v54 = vpop.f32.mrb[28].mxu0 }
 0x227   : > { %v663_v55 = vmax.f32 %v661_v37, %v637_v53  ;;  %v911_v56 = vmax.f32 %v909_v39, %v885_v54  ;;  %v639_v57 = vpop.f32.mrb[17].mxu1  ;;  %v887_v59 = vpop.f32.mrb[29].mxu0 }
 0x228   : > { %v680_v60 = vmax.f32 %v678_v42, %v639_v57  ;;  %v928_v61 = vmax.f32 %v926_v43, %v887_v59  ;;  %v641_v18 = vpop.f32.mrb[18].mxu1  ;;  %v889_v19 = vpop.f32.mrb[30].mxu0 }
 0x229   : > { %v664_v35 = vmax.f32 %v662_v46, %v641_v18  ;;  %v912_v38 = vmax.f32 %v910_v48, %v889_v19  ;;  %v643_v47 = vpop.f32.mrb[19].mxu1  ;;  %v891_v58 = vpop.f32.mrb[31].mxu0  ;;  %v696_v46 = vunpack.c.0.s8 %v695_v27  ;;  %v698_v48 = vshrl.u32 %v697_v28, 7 }
 0x22a   : > { %v681_v62 = vmax.f32 %v679_v51, %v643_v47  ;;  %v929_v63 = vmax.f32 %v927_v52, %v891_v58 }
 0x22b   : > { %v2233_v57 = vsub.s32 %v696_v46, %v698_v48 }
 0x22e   : > { %v647_v0 = vpop.f32.mrb[20].mxu1  ;;  %v895_v1 = vpop.f32.mrb[32].mxu0 }
 0x22f   : > { %v665_v2 = vmax.f32 %v663_v55, %v647_v0  ;;  %v913_v3 = vmax.f32 %v911_v56, %v895_v1  ;;  %v649_v4 = vpop.f32.mrb[21].mxu1  ;;  %v897_v5 = vpop.f32.mrb[33].mxu0 }
 0x230   : > { %v682_v6 = vmax.f32 %v680_v60, %v649_v4  ;;  %v930_v7 = vmax.f32 %v928_v61, %v897_v5  ;;  %v651_v8 = vpop.f32.mrb[22].mxu1  ;;  %v899_v13 = vpop.f32.mrb[34].mxu0 }
 0x231   : > { %v666_v9 = vmax.f32 %v664_v35, %v651_v8  ;;  %v914_v10 = vmax.f32 %v912_v38, %v899_v13  ;;  %v653_v11 = vpop.f32.mrb[23].mxu1  ;;  %v901_v12 = vpop.f32.mrb[35].mxu0 }
 0x232   : > { %v683_v14 = vmax.f32 %v681_v62, %v653_v11  ;;  %v931_v15 = vmax.f32 %v929_v63, %v901_v12 }
 0x233   : > { %v667_v16 = vmax.f32 %v665_v2, %v666_v9  ;;  %v915_v17 = vmax.f32 %v913_v3, %v914_v10 }
 0x234   : > { %v684_v21 = vmax.f32 %v682_v6, %v683_v14  ;;  %v932_v22 = vmax.f32 %v930_v7, %v931_v15  ;;  %v656_v14 = vld [vmem:[#allocation2] sm:$0x3]  ;;  %v904_v15 = vld [vmem:[#allocation2 + $0x2] sm:$0x3] }
 0x235   : > { %v668_v23 = vrot.slane %v667_v16, 4  ;;  %v916_v24 = vrot.slane %v915_v17, 4 }
 0x236   : > { %v685_v25 = vrot.slane %v684_v21, 4  ;;  %v933_v29 = vrot.slane %v932_v22, 4  ;;  %v1089_v30 = vpop.f32.mrb[24].mxu1  ;;  %v1333_v31 = vpop.f32.mrb[36].mxu0 }
 0x237   : > { %v669_v32 = vmax.f32 %v667_v16, %v668_v23  ;;  %v917_v33 = vmax.f32 %v915_v17, %v916_v24  ;;  %v1091_v20 = vpop.f32.mrb[25].mxu1  ;;  %v1335_v34 = vpop.f32.mrb[37].mxu0 }
 0x238   : > { %v686_v36 = vmax.f32 %v684_v21, %v685_v25  ;;  %v934_v37 = vmax.f32 %v932_v22, %v933_v29  ;;  %v1093_v39 = vpop.f32.mrb[26].mxu1  ;;  %v1337_v40 = vpop.f32.mrb[38].mxu0 }
 0x239   : > { %v670_v41 = vrot.slane %v669_v32, 2  ;;  %v918_v42 = vrot.slane %v917_v33, 2  ;;  %v2229_v43 = vpop.f32.mrb[27].mxu1  ;;  %v2231_v44 = vpop.f32.mrb[39].mxu0 }
 0x23a   : > { %v687_v45 = vrot.slane %v686_v36, 2  ;;  %v935_v49 = vrot.slane %v934_v37, 2 }
 0x23b   : > { %v671_v50 = vmax.f32 %v669_v32, %v670_v41  ;;  %v919_v51 = vmax.f32 %v917_v33, %v918_v42 }
 0x23c   : > { %v688_v52 = vmax.f32 %v686_v36, %v687_v45  ;;  %v936_v53 = vmax.f32 %v934_v37, %v935_v49 }
 0x23d   : > { %v672_v54 = vrot.slane %v671_v50, 1  ;;  %v920_v55 = vrot.slane %v919_v51, 1 }
 0x23e   : > { %v689_v56 = vrot.slane %v688_v52, 1  ;;  %v937_v59 = vrot.slane %v936_v53, 1  ;;  %v1099_v60 = vpop.f32.mrb[28].mxu1  ;;  %v1343_v61 = vpop.f32.mrb[40].mxu0 }
 0x23f   : > { %v673_v18 = vmax.f32 %v671_v50, %v672_v54  ;;  %v921_v19 = vmax.f32 %v919_v51, %v920_v55  ;;  %v1149_v35 = vmax.f32 %v1089_v30, %v1099_v60  ;;  %v1393_v38 = vmax.f32 %v1333_v31, %v1343_v61  ;;  %v1101_v47 = vpop.f32.mrb[29].mxu1  ;;  %v1345_v58 = vpop.f32.mrb[41].mxu0 }
 0x240   : > { %v690_v62 = vmax.f32 %v688_v52, %v689_v56  ;;  %v938_v63 = vmax.f32 %v936_v53, %v937_v59  ;;  %v1166_v0 = vmax.f32 %v1091_v20, %v1101_v47  ;;  %v1410_v1 = vmax.f32 %v1335_v34, %v1345_v58  ;;  %v1103_v2 = vpop.f32.mrb[30].mxu1  ;;  %v1347_v3 = vpop.f32.mrb[42].mxu0 }
 0x241   : > { %v1150_v4 = vmax.f32 %v1093_v39, %v1103_v2  ;;  %v1394_v5 = vmax.f32 %v1337_v40, %v1347_v3  ;;  %v1105_v6 = vpop.f32.mrb[31].mxu1  ;;  %v1349_v7 = vpop.f32.mrb[43].mxu0 }
 0x242   : > { %v693_v8 = vcombine.low %v673_v18, %v690_v62  ;;  %v941_v13 = vcombine.low %v921_v19, %v938_v63  ;;  %v1167_v9 = vmax.f32 %v2229_v43, %v1105_v6  ;;  %v1411_v10 = vmax.f32 %v2231_v44, %v1349_v7 }
 0x244   : > { %v700_v11 = vrot.slane %v693_v8, %v2233_v57  ;;  %v948_v12 = vrot.slane %v941_v13, %v2233_v57 }
 0x246   : > { %v707_v16 = vrot.slane %v700_v11, %v2233_v57  ;;  %v955_v17 = vrot.slane %v948_v12, %v2233_v57  ;;  %v1109_v21 = vpop.f32.mrb[32].mxu1  ;;  %v1353_v22 = vpop.f32.mrb[44].mxu0 }
 0x247   : > { %v1151_v24 = vmax.f32 %v1149_v35, %v1109_v21  ;;  %v1395_v25 = vmax.f32 %v1393_v38, %v1353_v22  ;;  %v1111_v26 = vpop.f32.mrb[33].mxu1  ;;  %v1355_v27 = vpop.f32.mrb[45].mxu0 }
 0x248   : > { %v709_v29 = vmax.f32 %v656_v14, %v707_v16  ;;  %v957_v30 = vmax.f32 %v904_v15, %v955_v17  ;;  %v1168_v31 = vmax.f32 %v1166_v0, %v1111_v26  ;;  %v1412_v32 = vmax.f32 %v1410_v1, %v1355_v27  ;;  %v1113_v33 = vpop.f32.mrb[34].mxu1  ;;  %v1357_v20 = vpop.f32.mrb[46].mxu0 }
 0x249   : > { %v1152_v34 = vmax.f32 %v1150_v4, %v1113_v33  ;;  %v1396_v36 = vmax.f32 %v1394_v5, %v1357_v20  ;;  %v1115_v37 = vpop.f32.mrb[35].mxu1  ;;  %v1359_v39 = vpop.f32.mrb[47].mxu0 }
 0x24a   : > { %714 = vst.msk [vmem:[#allocation2] sm:$0x3] %vm2241_vm1, %v709_v29  ;;  %958 = vst.msk [vmem:[#allocation2 + $0x2] sm:$0x3] %vm2241_vm1, %v957_v30  ;;  %v1169_v28 = vmax.f32 %v1167_v9, %v1115_v37  ;;  %v1413_v40 = vmax.f32 %v1411_v10, %v1359_v39 }
 0x24e   : > { %v1119_v41 = vpop.f32.mrb[36].mxu1  ;;  %v1363_v42 = vpop.f32.mrb[48].mxu0 }
 0x24f   : > { %v1153_v43 = vmax.f32 %v1151_v24, %v1119_v41  ;;  %v1397_v44 = vmax.f32 %v1395_v25, %v1363_v42  ;;  %v1121_v45 = vpop.f32.mrb[37].mxu1  ;;  %v1365_v46 = vpop.f32.mrb[49].mxu0 }
 0x250   : > { %v1170_v48 = vmax.f32 %v1168_v31, %v1121_v45  ;;  %v1414_v49 = vmax.f32 %v1412_v32, %v1365_v46  ;;  %v1123_v50 = vpop.f32.mrb[38].mxu1  ;;  %v1367_v51 = vpop.f32.mrb[50].mxu0 }
 0x251   : > { %v1154_v52 = vmax.f32 %v1152_v34, %v1123_v50  ;;  %v1398_v53 = vmax.f32 %v1396_v36, %v1367_v51  ;;  %v1125_v54 = vpop.f32.mrb[39].mxu1  ;;  %v1369_v55 = vpop.f32.mrb[51].mxu0 }
 0x252   : > { %v1171_v56 = vmax.f32 %v1169_v28, %v1125_v54  ;;  %v1415_v59 = vmax.f32 %v1413_v40, %v1369_v55  ;;  %v1148_v54 = vld [vmem:[#allocation2 + $0x4] sm:$0x3] }
 0x256   : > { %v1129_v60 = vpop.f32.mrb[40].mxu1  ;;  %v1373_v61 = vpop.f32.mrb[52].mxu0 }
 0x257   : > { %v1155_v18 = vmax.f32 %v1153_v43, %v1129_v60  ;;  %v1399_v19 = vmax.f32 %v1397_v44, %v1373_v61  ;;  %v1131_v35 = vpop.f32.mrb[41].mxu1  ;;  %v1375_v38 = vpop.f32.mrb[53].mxu0 }
 0x258   : > { %v1172_v47 = vmax.f32 %v1170_v48, %v1131_v35  ;;  %v1416_v58 = vmax.f32 %v1414_v49, %v1375_v38  ;;  %v1133_v62 = vpop.f32.mrb[42].mxu1  ;;  %v1377_v63 = vpop.f32.mrb[54].mxu0  ;;  %v1392_v38 = vld [vmem:[#allocation2 + $0x6] sm:$0x3] }
 0x259   : > { %v1156_v0 = vmax.f32 %v1154_v52, %v1133_v62  ;;  %v1400_v1 = vmax.f32 %v1398_v53, %v1377_v63  ;;  %v1135_v2 = vpop.f32.mrb[43].mxu1  ;;  %v1379_v3 = vpop.f32.mrb[55].mxu0 }
 0x25a   : > { %v1173_v4 = vmax.f32 %v1171_v56, %v1135_v2  ;;  %v1417_v5 = vmax.f32 %v1415_v59, %v1379_v3 }
 0x25e   : > { %v1139_v6 = vpop.f32.mrb[44].mxu1 }
 0x25f   : > { %v1157_v7 = vmax.f32 %v1155_v18, %v1139_v6  ;;  %v1141_v8 = vpop.f32.mrb[45].mxu1 }
 0x260   : > { %v1174_v13 = vmax.f32 %v1172_v47, %v1141_v8  ;;  %v1143_v9 = vpop.f32.mrb[46].mxu1 }
 0x261   : > { %v1158_v10 = vmax.f32 %v1156_v0, %v1143_v9  ;;  %v1145_v11 = vpop.f32.mrb[47].mxu1 }
 0x262   : > { %v1175_v12 = vmax.f32 %v1173_v4, %v1145_v11 }
 0x263   : > { %v1159_v14 = vmax.f32 %v1157_v7, %v1158_v10 }
 0x264   : > { %v1176_v15 = vmax.f32 %v1174_v13, %v1175_v12 }
 0x265   : > { %v1160_v16 = vrot.slane %v1159_v14, 4 }
 0x266   : > { %v1177_v17 = vrot.slane %v1176_v15, 4  ;;  %v1383_v21 = vpop.f32.mrb[48].mxu1 }
 0x267   : > { %v1161_v22 = vmax.f32 %v1159_v14, %v1160_v16  ;;  %v1401_v24 = vmax.f32 %v1399_v19, %v1383_v21  ;;  %v1385_v25 = vpop.f32.mrb[49].mxu1 }
 0x268   : > { %v1178_v26 = vmax.f32 %v1176_v15, %v1177_v17  ;;  %v1418_v27 = vmax.f32 %v1416_v58, %v1385_v25  ;;  %v1387_v29 = vpop.f32.mrb[50].mxu1 }
 0x269   : > { %v1162_v30 = vrot.slane %v1161_v22, 2  ;;  %v1402_v31 = vmax.f32 %v1400_v1, %v1387_v29  ;;  %v1389_v32 = vpop.f32.mrb[51].mxu1 }
 0x26a   : > { %v1179_v33 = vrot.slane %v1178_v26, 2  ;;  %v1419_v20 = vmax.f32 %v1417_v5, %v1389_v32 }
 0x26b   : > { %v1163_v34 = vmax.f32 %v1161_v22, %v1162_v30  ;;  %v1403_v36 = vmax.f32 %v1401_v24, %v1402_v31 }
 0x26c   : > { %v1180_v37 = vmax.f32 %v1178_v26, %v1179_v33  ;;  %v1420_v39 = vmax.f32 %v1418_v27, %v1419_v20 }
 0x26d   : > { %v1164_v28 = vrot.slane %v1163_v34, 1  ;;  %v1404_v40 = vrot.slane %v1403_v36, 4 }
 0x26e   : > { %v1181_v41 = vrot.slane %v1180_v37, 1  ;;  %v1421_v42 = vrot.slane %v1420_v39, 4 }
 0x26f   : > { %v1165_v43 = vmax.f32 %v1163_v34, %v1164_v28  ;;  %v1405_v44 = vmax.f32 %v1403_v36, %v1404_v40 }
 0x270   : > { %v1182_v45 = vmax.f32 %v1180_v37, %v1181_v41  ;;  %v1422_v46 = vmax.f32 %v1420_v39, %v1421_v42 }
 0x271   : > { %v1406_v48 = vrot.slane %v1405_v44, 2 }
 0x272   : > { %v1185_v49 = vcombine.low %v1165_v43, %v1182_v45  ;;  %v1423_v50 = vrot.slane %v1422_v46, 2 }
 0x273   : > { %v1407_v51 = vmax.f32 %v1405_v44, %v1406_v48 }
 0x274   : > { %v1192_v52 = vrot.slane %v1185_v49, %v2233_v57  ;;  %v1424_v53 = vmax.f32 %v1422_v46, %v1423_v50 }
 0x275   : > { %v1408_v55 = vrot.slane %v1407_v51, 1 }
 0x276   : > { %v1199_v56 = vrot.slane %v1192_v52, %v2233_v57  ;;  %v1425_v59 = vrot.slane %v1424_v53, 1 }
 0x277   : > { %v1409_v60 = vmax.f32 %v1407_v51, %v1408_v55 }
 0x278   : > { %v1201_v61 = vmax.f32 %v1148_v54, %v1199_v56  ;;  %v1426_v18 = vmax.f32 %v1424_v53, %v1425_v59 }
 0x27a   : > { %1202 = vst.msk [vmem:[#allocation2 + $0x4] sm:$0x3] %vm2241_vm1, %v1201_v61  ;;  %v1429_v19 = vcombine.low %v1409_v60, %v1426_v18 }
 0x27c   : > { %v1436_v35 = vrot.slane %v1429_v19, %v2233_v57  ;;  %1450 = sbr.rel (%p1655_p13) target bundleno = 651 (0x28b), region = 48 }
 0x27e   : > { %v1443_v47 = vrot.slane %v1436_v35, %v2233_v57 }
 0x280   : > { %v1445_v58 = vmax.f32 %v1392_v38, %v1443_v47 }
 0x282   : > { %1446 = vst.msk [vmem:[#allocation2 + $0x6] sm:$0x3] %vm2241_vm1, %v1445_v58 }
 0x289   : > { %v1451_v62 = vld [vmem:[#allocation2] sm:$0xff] }
 0x28a   : > { %1452 = vst [vmem:[%s247_s11] sm:$0xff] %v1451_v62 }
 0x28b PF: > { %s1661_s12 = sshll.u32 %s1920_s19, 7  ;;  %s1470_s9 = sshll.u32 %s247_s11, 4  ;;  %s1471_s9 = int_to_ptr.vmem [resolvable:$true] %s1470_s9 }
 0x28c   : > { %s2264_s10 = scalar_lea.hbm %s2319_s4, %s1661_s12  ;;  %s1454_s18 = scalar_lea.sflag [#allocation5], %s245_s13 }
 0x28d   : > { %s1834_s24 = scalar_lea.vmem %s1471_s9, 128  ;;  %p2333_p2 = scmp.ne.s32.totalorder %s2324_s28, 0 }
 0x28e   : > { %p1835_p0 = scmp.ne.s32.totalorder %s1471_s9, %s1834_s24  ;;  %s1940_s27 = smov [#allocation6]  }
 0x28f   : > { %s1838_s6 = sshll.u32 %s1940_s27, 4  ;;  %s1839_s6 = int_to_ptr.vmem [resolvable:$false] %s1838_s6 }
 0x290   : > { %p1836_p5 = pnand %p1835_p0, %p2333_p2  ;;  %s1840_s5 = scalar_lea.vmem %s1839_s6, 256 }
 0x291   : > { %p1841_p7 = scmp.lt.s32.totalorder %s1471_s9, %s1839_s6  ;;  %p1842_p8 = scmp.lt.s32.totalorder %s1840_s5, %s1834_s24 }
 0x292   : > { %p1837_p6 = pneg %p1836_p5 }
 0x293   : > { %p1843_p11 = por %p1842_p8, %p1841_p7 }
 0x295   : > { %p1844_p12 = pnand %p1843_p11, %p1837_p6 }
 0x297   : > { %1847 = shalt.err (!%p1844_p12)
}
 0x298   : > { %s1848_s19 = scalar_lea.hbm %s2264_s10, 128  ;;  %s1852_s11 = scalar_lea.hbm %s2319_s4, 256 }
 0x299   : > { %p1849_p1 = scmp.ne.s32.totalorder %s2264_s10, %s1848_s19  ;;  %p1853_p9 = scmp.lt.u32.totalorder %s2264_s10, %s2319_s4 }
 0x29a   : > { %p1854_p10 = scmp.lt.u32.totalorder %s1852_s11, %s1848_s19  ;;  %p1856_p0 = scmp.lt.u32.totalorder %s1848_s19, %s2264_s10 }
 0x29b   : > { %p1850_p4 = pnand %p1849_p1, %p2333_p2 }
 0x29c   : > { %p1855_p13 = por %p1854_p10, %p1853_p9 }
 0x29d   : > { %p1851_p3 = pneg %p1850_p4 }
 0x29e   : > { %p1857_p5 = por %p1856_p0, %p1855_p13 }
 0x2a0   : > { %p1858_p6 = pnand %p1857_p5, %p1851_p3 }
 0x2a2   : > { %1861 = shalt.err (!%p1858_p6)
}
 0x2a3   : > { %1713 = dma.vmem_to_hbm [thread:$0]  (%p2333_p2), %s1471_s9, 128, %s2264_s10, %s1454_s18  }
 0x2a4 PF: > { %p1725_p7 = scmp.ge.s32.totalorder %s1932_s22, 2  ;;  %s1482_s14 = sand.u32 1, %s1904_s15  }
 0x2a5   : > { %p2334_p8 = scmp.ne.s32.totalorder %s2325_s29, 0  ;;  %s1483_s30 = scalar_lea.sflag [#allocation5], %s1482_s14 }
 0x2a7   : > { %p1720_p11 = pnand %p1725_p7, %p2334_p8 }
 0x2a9   : > { %1899 = dma.done.wait (!%p1720_p11), %s1483_s30, 128  }
 0x2aa   : > { %1901 = vsyncadd (!%p1720_p11), %s1483_s30, 4294967168  ;;  %s18_s22 = sadd.s32 1, %s1932_s22   ;;  %s2335_s15 = smov %s1908_s16 }
 0x2ab   : > { %p15_p12 = scmp.ge.s32.totalorder %s18_s22, 8   ;;  %s2336_s16 = smov %s1912_s17 }
 0x2ac   : > { %s2337_s17 = smov %s2043_s7  ;;  %s2338_s18 = smov %s1924_s20 }
 0x2ad   : > { %s2339_s19 = smov %s1928_s21  ;;  %s2340_s20 = smov %s2343_s25 }
 0x2ae   : > { %s2341_s21 = smov %s2347_s26  ;;  %17 = sbr.rel (!%p15_p12) target bundleno = 6 (0x6), region = 84 }
 0x2b5   :  { %1488 = vsyncpa [#allocation4], 1 }
 0x2b6   :  { %1490 = vsyncpa [#allocation4 + $0x1], 1 }
 0x2b7   :  { %1491 = vsyncpa [#allocation5], 1 }
 0x2b8   :  { %1493 = vsyncpa [#allocation5 + $0x1], 1 }

</bundles_post_ra>
